<compile_context>
chip_gen: v7x
topology: tpu7x:2x2x1
jax: 0.10.0
libtpu: 0.0.40
codegen_flags: <defaults>
</compile_context>

<pallas_src>
import jax
import jax.numpy as jnp
from jax.experimental import pallas as pl
from jax.experimental.pallas import tpu as pltpu


TYPE_LIST = ["classify", "nli", "generate", "mrc", "anaphora_resolution"]

_SQRT_2_OVER_PI = 0.7978845608028654


def _gelu_new(x):
    # T5 "gelu_new" (tanh approximation), computed in f32.
    return 0.5 * x * (1.0 + jnp.tanh(_SQRT_2_OVER_PI * (x + 0.044715 * x * x * x)))


def _pick_tile(total, target, multiple):
    """Largest divisor of `total` that is <= target and a multiple of `multiple`;
    falls back to the full extent (always legal: block dim == array dim)."""
    if total <= target:
        return total
    start = target - (target % multiple)
    for t in range(start, 0, -multiple):
        if total % t == 0:
            return t
    return total


def _tile_targets():
    """Per-generation tile targets.  v5e/v6e (128 MiB VMEM) take the large,
    high-intensity tiles; v7x (64 MiB VMEM) is capped lower."""
    try:
        vmem = pltpu.get_tpu_info().vmem_capacity_bytes
    except Exception:
        vmem = 64 << 20
    if vmem >= (100 << 20):
        return 1024, 1024   # v5e / v6e
    return 512, 512         # v7x


# ---------------------------------------------------------------------------
# Fused shared-expert + routed-expert gated FFN kernel.
# Grid: (B, S_tiles, F_tiles); F (last axis) is the reduction -> "arbitrary".
# B and S_tiles are "parallel" so megacore (v7x) shards B*S_tiles blocks.
# ---------------------------------------------------------------------------
def _fused_moe_ffn_kernel(ids_ref,                               # scalar prefetch (SMEM)
                          x_ref,                                 # (S_t, D) bf16
                          sh_wi0_ref, sh_wi1_ref, sh_wo_ref,     # shared expert F-tiles
                          e_wi0_ref, e_wi1_ref, e_wo_ref,        # routed expert F-tiles
                          sh_out_ref, ex_out_ref,                # (S_t, D) bf16 outputs
                          acc_sh, acc_ex):                       # f32 VMEM accumulators
    f = pl.program_id(2)

    @pl.when(f == 0)
    def _():
        acc_sh[...] = jnp.zeros_like(acc_sh)
        acc_ex[...] = jnp.zeros_like(acc_ex)

    # x_spec's index_map is f-independent, so this block is fetched once per
    # (b, s) and stays VMEM-resident across all F steps (no re-DMA).
    x = x_ref[...].astype(jnp.bfloat16)

    def gated_ffn_tile(wi0, wi1, wo):
        # One F-tile of: ( gelu_new(x @ wi0) * (x @ wi1) ) @ wo
        # The gated activation is elementwise in F, so per-tile partial
        # products sum correctly through the wo contraction.
        g = jnp.dot(x, wi0, preferred_element_type=jnp.float32)      # (S_t, F_t) f32
        lin = jnp.dot(x, wi1, preferred_element_type=jnp.float32)    # (S_t, F_t) f32
        h = (_gelu_new(g) * lin).astype(jnp.bfloat16)                # stays in vregs
        return jnp.dot(h, wo, preferred_element_type=jnp.float32)    # (S_t, D) f32

    acc_sh[...] += gated_ffn_tile(sh_wi0_ref[...], sh_wi1_ref[...], sh_wo_ref[...])
    acc_ex[...] += gated_ffn_tile(e_wi0_ref[...], e_wi1_ref[...], e_wo_ref[...])

    @pl.when(f == pl.num_programs(2) - 1)
    def _():
        sh_out_ref[...] = acc_sh[...].astype(sh_out_ref.dtype)
        ex_out_ref[...] = acc_ex[...].astype(ex_out_ref.dtype)


def fused_moe_ffn(x, type_ids, sh_wi0, sh_wi1, sh_wo, e_wi0, e_wi1, e_wo,
                  *, s_tile=None, f_tile=None):
    """Shared-expert and routed-expert gated FFN in one pallas_call.

    x        : (B, S, D) (any float dtype; cast to bf16 for the MXU)
    type_ids : (B,) int routed-expert index per batch element
    sh_*     : shared expert weights, stored (in, out): (D, F), (D, F), (F, D)
    e_*      : stacked routed expert weights: (E, D, F), (E, D, F), (E, F, D)
    returns (shared_out, expert_out), both (B, S, D) bf16.
    """
    B, S, D = x.shape
    E = e_wi0.shape[0]
    F = sh_wi0.shape[-1]

    s_target, f_target = _tile_targets()
    if s_tile is None:
        s_tile = _pick_tile(S, s_target, 8)     # tokens per block: intensity knob
    if f_tile is None:
        f_tile = _pick_tile(F, f_target, 128)   # d_ff tile: reduction step size
    assert S % s_tile == 0 and F % f_tile == 0

    # OOB-DMA guard: a bad id would otherwise drive an out-of-range HBM DMA.
    ids = jnp.clip(type_ids.astype(jnp.int32), 0, E - 1)
    x_bf16 = x.astype(jnp.bfloat16)

    grid = (B, S // s_tile, F // f_tile)

    # index_maps receive (b, s, f, *prefetch_refs); type_ids lives in SMEM.
    x_spec = pl.BlockSpec((None, s_tile, D), lambda b, s, f, ids: (b, s, 0))
    out_spec = pl.BlockSpec((None, s_tile, D), lambda b, s, f, ids: (b, s, 0))
    sh_wi_spec = pl.BlockSpec((D, f_tile), lambda b, s, f, ids: (0, f))
    sh_wo_spec = pl.BlockSpec((f_tile, D), lambda b, s, f, ids: (f, 0))
    # Routed expert tiles are DMA'd straight from the stacked tensors.
    e_wi_spec = pl.BlockSpec((None, D, f_tile), lambda b, s, f, ids: (ids[b], 0, f))
    e_wo_spec = pl.BlockSpec((None, f_tile, D), lambda b, s, f, ids: (ids[b], f, 0))

    # VMEM budget for the chosen tiles (double-buffered pipeline) so big tiles
    # don't trip the 32 MiB default scoped limit.  Never request less than the
    # default, cap well below v5e/v6e's 128 MiB (v7x's targets keep it small).
    vmem_need = (24 * D * f_tile        # 6 bf16 weight streams, 2x buffered
                 + 4 * s_tile * D       # x (bf16), 2x buffered
                 + 8 * s_tile * D       # 2 bf16 outputs, 2x buffered
                 + 8 * s_tile * D)      # 2 f32 accumulators (scratch)
    vmem_limit = max(min(vmem_need + (8 << 20), 100 << 20), 32 << 20)

    cost = pl.CostEstimate(
        flops=12 * B * S * D * F,                       # 2 gated FFNs, 3 matmuls each
        transcendentals=2 * B * S * F,                  # tanh in gelu_new, both FFNs
        bytes_accessed=(B * (S // s_tile) * 6 * D * F * 2   # weight streaming (bf16)
                        + 3 * B * S * D * 2))                # x in + 2 outs (bf16)

    shared_out, expert_out = pl.pallas_call(
        _fused_moe_ffn_kernel,
        out_shape=(jax.ShapeDtypeStruct((B, S, D), jnp.bfloat16),
                   jax.ShapeDtypeStruct((B, S, D), jnp.bfloat16)),
        grid_spec=pltpu.PrefetchScalarGridSpec(
            num_scalar_prefetch=1,
            grid=grid,
            in_specs=[x_spec,
                      sh_wi_spec, sh_wi_spec, sh_wo_spec,
                      e_wi_spec, e_wi_spec, e_wo_spec],
            out_specs=[out_spec, out_spec],
            scratch_shapes=[pltpu.VMEM((s_tile, D), jnp.float32),
                            pltpu.VMEM((s_tile, D), jnp.float32)]),
        compiler_params=pltpu.CompilerParams(
            dimension_semantics=("parallel", "parallel", "arbitrary"),
            vmem_limit_bytes=int(vmem_limit)),
        cost_estimate=cost,
    )(ids, x_bf16, sh_wi0, sh_wi1, sh_wo, e_wi0, e_wi1, e_wo)
    return shared_out, expert_out


# ---------------------------------------------------------------------------
# MTA_sharemoe forward
# ---------------------------------------------------------------------------
@jax.jit
def mta_sharemoe_forward(params, hidden_states, type_ids):
    """hidden_states: (B, S, D) f32; type_ids: (B,) int32 expert index."""
    shared_out, expert_out = fused_moe_ffn(
        hidden_states, type_ids,
        params["sh_wi0"], params["sh_wi1"], params["sh_wo"],
        params["e_wi0"], params["e_wi1"], params["e_wo"])

    expert_f32 = expert_out.astype(jnp.float32)
    shared_f32 = shared_out.astype(jnp.float32)

    # Gate (token 0 only), matching PyTorch ordering:
    #   gate_in = cat(expert_out[0], shared_out[0]); out = expert*w0 + shared*w1
    gate_in = jnp.concatenate([expert_f32[:, 0, :], shared_f32[:, 0, :]], axis=-1)  # (B, 2D)
    g_h = jnp.maximum(gate_in @ params["g1"], 0.0)            # (B, D)
    weights = jax.nn.softmax(g_h @ params["g2"], axis=-1)     # (B, 2)

    out = (expert_f32 * weights[:, 0, None, None]
           + shared_f32 * weights[:, 1, None, None])
    return out


# ---------------------------------------------------------------------------
# Deterministic parameter init (synthetic; shapes follow MTAConfig usage).
# FFN weights stored bf16 (pre-transposed to (in, out)); gate weights f32.
# ---------------------------------------------------------------------------
def init_params(key, num_experts, d_model, d_ff):
    ks = jax.random.split(key, 8)
    s_in = 1.0 / (d_model ** 0.5)
    s_ff = 1.0 / (d_ff ** 0.5)
    bf16 = jnp.bfloat16
    return {
        "e_wi0": (jax.random.normal(ks[0], (num_experts, d_model, d_ff), jnp.float32) * s_in).astype(bf16),
        "e_wi1": (jax.random.normal(ks[1], (num_experts, d_model, d_ff), jnp.float32) * s_in).astype(bf16),
        "e_wo":  (jax.random.normal(ks[2], (num_experts, d_ff, d_model), jnp.float32) * s_ff).astype(bf16),
        "sh_wi0": (jax.random.normal(ks[3], (d_model, d_ff), jnp.float32) * s_in).astype(bf16),
        "sh_wi1": (jax.random.normal(ks[4], (d_model, d_ff), jnp.float32) * s_in).astype(bf16),
        "sh_wo":  (jax.random.normal(ks[5], (d_ff, d_model), jnp.float32) * s_ff).astype(bf16),
        # gate (my_hidden_size == d_model): Linear(2D, D), Linear(D, 2)
        "g1": jax.random.normal(ks[6], (2 * d_model, d_model), jnp.float32) * (1.0 / ((2 * d_model) ** 0.5)),
        "g2": jax.random.normal(ks[7], (d_model, 2), jnp.float32) * (1.0 / (d_model ** 0.5)),
    }


# Pure-JAX reference for the gated FFN (f32 math on the stored weights).
def _ref_gated_ffn(x, wi0, wi1, wo):
    xf = x.astype(jnp.float32)
    g = xf @ wi0.astype(jnp.float32)
    lin = xf @ wi1.astype(jnp.float32)
    h = _gelu_new(g) * lin
    return h @ wo.astype(jnp.float32)


if __name__ == "__main__":
    # Small config: B=2, S=16, D=128 (lane-dense outputs), F=256, one expert per
    # task type.  NOTE: to draw perf conclusions use realistic T5 shapes
    # (D >= 768, F >= 2048, S >= 512) so the MXU / HBM balance is representative.
    B, S, D, F = 2, 16, 128, 256
    NUM_EXPERTS = len(TYPE_LIST)

    key = jax.random.PRNGKey(0)
    k_par, k_x = jax.random.split(key)
    params = init_params(k_par, NUM_EXPERTS, D, F)
    hidden_states = jax.random.normal(k_x, (B, S, D), jnp.float32)
    type_label = ["classify", "mrc"]   # one task label per batch element
    type_ids = jnp.asarray([TYPE_LIST.index(t) for t in type_label], dtype=jnp.int32)

    out = mta_sharemoe_forward(params, hidden_states, type_ids)
    out = jax.block_until_ready(out)
    assert out.shape == (B, S, D), out.shape

    # Numeric check of the Pallas FFN against a pure-JAX reference; force
    # f_tile=128 so the multi-step F accumulation path is exercised.
    # (Loose tolerance: kernel runs the matmuls in bf16 and stores bf16.)
    shared_out, expert_out = fused_moe_ffn(
        hidden_states, type_ids,
        params["sh_wi0"], params["sh_wi1"], params["sh_wo"],
        params["e_wi0"], params["e_wi1"], params["e_wo"],
        f_tile=128)
    ref_shared = _ref_gated_ffn(hidden_states, params["sh_wi0"],
                                params["sh_wi1"], params["sh_wo"])
    ref_expert = jnp.stack([
        _ref_gated_ffn(hidden_states[i], params["e_wi0"][type_ids[i]],
                       params["e_wi1"][type_ids[i]], params["e_wo"][type_ids[i]])
        for i in range(B)])
    assert jnp.allclose(shared_out.astype(jnp.float32), ref_shared, atol=1e-1, rtol=1e-1)
    assert jnp.allclose(expert_out.astype(jnp.float32), ref_expert, atol=1e-1, rtol=1e-1)

    print("KERNEL_OK")
</pallas_src>

<mosaic_0001>
module attributes {stable_mosaic.version = 11 : i64} {
  func.func @_fused_moe_ffn_kernel(%arg0: i32, %arg1: i32, %arg2: i32, %arg3: memref<2xi32, #tpu.memory_space<smem>>, %arg4: memref<1x16x128xbf16, #tpu.memory_space<vmem>>, %arg5: memref<128x256xbf16, #tpu.memory_space<vmem>>, %arg6: memref<128x256xbf16, #tpu.memory_space<vmem>>, %arg7: memref<256x128xbf16, #tpu.memory_space<vmem>>, %arg8: memref<1x128x256xbf16, #tpu.memory_space<vmem>>, %arg9: memref<1x128x256xbf16, #tpu.memory_space<vmem>>, %arg10: memref<1x256x128xbf16, #tpu.memory_space<vmem>>, %arg11: memref<1x16x128xbf16, #tpu.memory_space<vmem>>, %arg12: memref<1x16x128xbf16, #tpu.memory_space<vmem>>, %arg13: memref<16x128xf32, #tpu.memory_space<vmem>>, %arg14: memref<16x128xf32, #tpu.memory_space<vmem>>) attributes {dimension_semantics = [#tpu.dimension_semantics<parallel>, #tpu.dimension_semantics<parallel>, #tpu.dimension_semantics<arbitrary>], iteration_bounds = array<i64: 2, 1, 1>, scalar_prefetch = 1 : i64, scratch_operands = 2 : i64, tpu.core_type = #tpu.core_type<tc>, window_params = [{transform_indices = @transform_0, window_bounds = array<i64: 1, 16, 128>}, {transform_indices = @transform_1, window_bounds = array<i64: 128, 256>}, {transform_indices = @transform_2, window_bounds = array<i64: 128, 256>}, {transform_indices = @transform_3, window_bounds = array<i64: 256, 128>}, {transform_indices = @transform_4, window_bounds = array<i64: 1, 128, 256>}, {transform_indices = @transform_5, window_bounds = array<i64: 1, 128, 256>}, {transform_indices = @transform_6, window_bounds = array<i64: 1, 256, 128>}, {transform_indices = @transform_7, window_bounds = array<i64: 1, 16, 128>}, {transform_indices = @transform_8, window_bounds = array<i64: 1, 16, 128>}]} {
    %c0_i32 = arith.constant 0 : i32
    %0 = arith.cmpi eq, %arg2, %c0_i32 : i32
    %1 = arith.extui %0 : i1 to i32
    %c0_i32_0 = arith.constant 0 : i32
    %2 = arith.cmpi ne, %1, %c0_i32_0 : i32
    scf.if %2 {
      %cst_41 = arith.constant 0.000000e+00 : f32
      %59 = vector.broadcast %cst_41 : f32 to vector<16x128xf32>
      %c0_42 = arith.constant 0 : index
      %c0_43 = arith.constant 0 : index
      %60 = vector.load %arg13[%c0_42, %c0_43] : memref<16x128xf32, #tpu.memory_space<vmem>>, vector<16x128xf32>
      tpu.vector_store %arg13[%c0_42, %c0_43], %59 {strides = array<i32>} : memref<16x128xf32, #tpu.memory_space<vmem>>, vector<16x128xf32>,
      %cst_44 = arith.constant 0.000000e+00 : f32
      %61 = vector.broadcast %cst_44 : f32 to vector<16x128xf32>
      %c0_45 = arith.constant 0 : index
      %c0_46 = arith.constant 0 : index
      %62 = vector.load %arg14[%c0_45, %c0_46] : memref<16x128xf32, #tpu.memory_space<vmem>>, vector<16x128xf32>
      tpu.vector_store %arg14[%c0_45, %c0_46], %61 {strides = array<i32>} : memref<16x128xf32, #tpu.memory_space<vmem>>, vector<16x128xf32>,
    } else {
    }
    %c0 = arith.constant 0 : index
    %c0_1 = arith.constant 0 : index
    %c0_2 = arith.constant 0 : index
    %3 = vector.load %arg4[%c0, %c0_1, %c0_2] : memref<1x16x128xbf16, #tpu.memory_space<vmem>>, vector<1x16x128xbf16>
    %4 = vector.shape_cast %3 : vector<1x16x128xbf16> to vector<16x128xbf16>
    %c0_3 = arith.constant 0 : index
    %c0_4 = arith.constant 0 : index
    %5 = vector.load %arg13[%c0_3, %c0_4] : memref<16x128xf32, #tpu.memory_space<vmem>>, vector<16x128xf32>
    %c0_5 = arith.constant 0 : index
    %c0_6 = arith.constant 0 : index
    %6 = vector.load %arg5[%c0_5, %c0_6] : memref<128x256xbf16, #tpu.memory_space<vmem>>, vector<128x256xbf16>
    %c0_7 = arith.constant 0 : index
    %c0_8 = arith.constant 0 : index
    %7 = vector.load %arg6[%c0_7, %c0_8] : memref<128x256xbf16, #tpu.memory_space<vmem>>, vector<128x256xbf16>
    %c0_9 = arith.constant 0 : index
    %c0_10 = arith.constant 0 : index
    %8 = vector.load %arg7[%c0_9, %c0_10] : memref<256x128xbf16, #tpu.memory_space<vmem>>, vector<256x128xbf16>
    %cst = arith.constant dense<0.000000e+00> : vector<16x256xf32>
    %9 = tpu.matmul %4, %6, %cst {dimension_numbers = #tpu.dot_dimension_numbers<[1], [0], [0], [1], [0, 0, 1, 1], [], []>} : vector<16x128xbf16>, vector<128x256xbf16>, vector<16x256xf32> -> vector<16x256xf32>
    %cst_11 = arith.constant dense<0.000000e+00> : vector<16x256xf32>
    %10 = tpu.matmul %4, %7, %cst_11 {dimension_numbers = #tpu.dot_dimension_numbers<[1], [0], [0], [1], [0, 0, 1, 1], [], []>} : vector<16x128xbf16>, vector<128x256xbf16>, vector<16x256xf32> -> vector<16x256xf32>
    %cst_12 = arith.constant 5.000000e-01 : f32
    %11 = vector.broadcast %cst_12 : f32 to vector<16x256xf32>
    %12 = arith.mulf %11, %9 : vector<16x256xf32>
    %cst_13 = arith.constant 4.471500e-02 : f32
    %13 = vector.broadcast %cst_13 : f32 to vector<16x256xf32>
    %14 = arith.mulf %13, %9 : vector<16x256xf32>
    %15 = arith.mulf %14, %9 : vector<16x256xf32>
    %16 = arith.mulf %15, %9 : vector<16x256xf32>
    %17 = arith.addf %9, %16 : vector<16x256xf32>
    %cst_14 = arith.constant 0.797884583 : f32
    %18 = vector.broadcast %cst_14 : f32 to vector<16x256xf32>
    %19 = arith.mulf %18, %17 : vector<16x256xf32>
    %20 = math.tanh %19 : vector<16x256xf32>
    %cst_15 = arith.constant 1.000000e+00 : f32
    %21 = vector.broadcast %cst_15 : f32 to vector<16x256xf32>
    %22 = arith.addf %21, %20 : vector<16x256xf32>
    %23 = arith.mulf %12, %22 : vector<16x256xf32>
    %24 = arith.mulf %23, %10 : vector<16x256xf32>
    %25 = arith.truncf %24 : vector<16x256xf32> to vector<16x256xbf16>
    %cst_16 = arith.constant dense<0.000000e+00> : vector<16x128xf32>
    %26 = tpu.matmul %25, %8, %cst_16 {dimension_numbers = #tpu.dot_dimension_numbers<[1], [0], [0], [1], [0, 0, 1, 1], [], []>} : vector<16x256xbf16>, vector<256x128xbf16>, vector<16x128xf32> -> vector<16x128xf32>
    %27 = arith.addf %5, %26 : vector<16x128xf32>
    %c0_17 = arith.constant 0 : index
    %c0_18 = arith.constant 0 : index
    %28 = vector.load %arg13[%c0_17, %c0_18] : memref<16x128xf32, #tpu.memory_space<vmem>>, vector<16x128xf32>
    tpu.vector_store %arg13[%c0_17, %c0_18], %27 {strides = array<i32>} : memref<16x128xf32, #tpu.memory_space<vmem>>, vector<16x128xf32>,
    %c0_19 = arith.constant 0 : index
    %c0_20 = arith.constant 0 : index
    %29 = vector.load %arg14[%c0_19, %c0_20] : memref<16x128xf32, #tpu.memory_space<vmem>>, vector<16x128xf32>
    %c0_21 = arith.constant 0 : index
    %c0_22 = arith.constant 0 : index
    %c0_23 = arith.constant 0 : index
    %30 = vector.load %arg8[%c0_21, %c0_22, %c0_23] : memref<1x128x256xbf16, #tpu.memory_space<vmem>>, vector<1x128x256xbf16>
    %31 = vector.shape_cast %30 : vector<1x128x256xbf16> to vector<128x256xbf16>
    %c0_24 = arith.constant 0 : index
    %c0_25 = arith.constant 0 : index
    %c0_26 = arith.constant 0 : index
    %32 = vector.load %arg9[%c0_24, %c0_25, %c0_26] : memref<1x128x256xbf16, #tpu.memory_space<vmem>>, vector<1x128x256xbf16>
    %33 = vector.shape_cast %32 : vector<1x128x256xbf16> to vector<128x256xbf16>
    %c0_27 = arith.constant 0 : index
    %c0_28 = arith.constant 0 : index
    %c0_29 = arith.constant 0 : index
    %34 = vector.load %arg10[%c0_27, %c0_28, %c0_29] : memref<1x256x128xbf16, #tpu.memory_space<vmem>>, vector<1x256x128xbf16>
    %35 = vector.shape_cast %34 : vector<1x256x128xbf16> to vector<256x128xbf16>
    %cst_30 = arith.constant dense<0.000000e+00> : vector<16x256xf32>
    %36 = tpu.matmul %4, %31, %cst_30 {dimension_numbers = #tpu.dot_dimension_numbers<[1], [0], [0], [1], [0, 0, 1, 1], [], []>} : vector<16x128xbf16>, vector<128x256xbf16>, vector<16x256xf32> -> vector<16x256xf32>
    %cst_31 = arith.constant dense<0.000000e+00> : vector<16x256xf32>
    %37 = tpu.matmul %4, %33, %cst_31 {dimension_numbers = #tpu.dot_dimension_numbers<[1], [0], [0], [1], [0, 0, 1, 1], [], []>} : vector<16x128xbf16>, vector<128x256xbf16>, vector<16x256xf32> -> vector<16x256xf32>
    %cst_32 = arith.constant 5.000000e-01 : f32
    %38 = vector.broadcast %cst_32 : f32 to vector<16x256xf32>
    %39 = arith.mulf %38, %36 : vector<16x256xf32>
    %cst_33 = arith.constant 4.471500e-02 : f32
    %40 = vector.broadcast %cst_33 : f32 to vector<16x256xf32>
    %41 = arith.mulf %40, %36 : vector<16x256xf32>
    %42 = arith.mulf %41, %36 : vector<16x256xf32>
    %43 = arith.mulf %42, %36 : vector<16x256xf32>
    %44 = arith.addf %36, %43 : vector<16x256xf32>
    %cst_34 = arith.constant 0.797884583 : f32
    %45 = vector.broadcast %cst_34 : f32 to vector<16x256xf32>
    %46 = arith.mulf %45, %44 : vector<16x256xf32>
    %47 = math.tanh %46 : vector<16x256xf32>
    %cst_35 = arith.constant 1.000000e+00 : f32
    %48 = vector.broadcast %cst_35 : f32 to vector<16x256xf32>
    %49 = arith.addf %48, %47 : vector<16x256xf32>
    %50 = arith.mulf %39, %49 : vector<16x256xf32>
    %51 = arith.mulf %50, %37 : vector<16x256xf32>
    %52 = arith.truncf %51 : vector<16x256xf32> to vector<16x256xbf16>
    %cst_36 = arith.constant dense<0.000000e+00> : vector<16x128xf32>
    %53 = tpu.matmul %52, %35, %cst_36 {dimension_numbers = #tpu.dot_dimension_numbers<[1], [0], [0], [1], [0, 0, 1, 1], [], []>} : vector<16x256xbf16>, vector<256x128xbf16>, vector<16x128xf32> -> vector<16x128xf32>
    %54 = arith.addf %29, %53 : vector<16x128xf32>
    %c0_37 = arith.constant 0 : index
    %c0_38 = arith.constant 0 : index
    %55 = vector.load %arg14[%c0_37, %c0_38] : memref<16x128xf32, #tpu.memory_space<vmem>>, vector<16x128xf32>
    tpu.vector_store %arg14[%c0_37, %c0_38], %54 {strides = array<i32>} : memref<16x128xf32, #tpu.memory_space<vmem>>, vector<16x128xf32>,
    %c0_i32_39 = arith.constant 0 : i32
    %56 = arith.cmpi eq, %arg2, %c0_i32_39 : i32
    %57 = arith.extui %56 : i1 to i32
    %c0_i32_40 = arith.constant 0 : i32
    %58 = arith.cmpi ne, %57, %c0_i32_40 : i32
    scf.if %58 {
      %c0_41 = arith.constant 0 : index
      %c0_42 = arith.constant 0 : index
      %59 = vector.load %arg13[%c0_41, %c0_42] : memref<16x128xf32, #tpu.memory_space<vmem>>, vector<16x128xf32>
      %60 = arith.truncf %59 : vector<16x128xf32> to vector<16x128xbf16>
      %c0_43 = arith.constant 0 : index
      %c0_44 = arith.constant 0 : index
      %c0_45 = arith.constant 0 : index
      %61 = vector.load %arg11[%c0_43, %c0_44, %c0_45] : memref<1x16x128xbf16, #tpu.memory_space<vmem>>, vector<1x16x128xbf16>
      %62 = vector.shape_cast %61 : vector<1x16x128xbf16> to vector<16x128xbf16>
      %63 = vector.shape_cast %60 : vector<16x128xbf16> to vector<1x16x128xbf16>
      tpu.vector_store %arg11[%c0_43, %c0_44, %c0_45], %63 {strides = array<i32>} : memref<1x16x128xbf16, #tpu.memory_space<vmem>>, vector<1x16x128xbf16>,
      %c0_46 = arith.constant 0 : index
      %c0_47 = arith.constant 0 : index
      %64 = vector.load %arg14[%c0_46, %c0_47] : memref<16x128xf32, #tpu.memory_space<vmem>>, vector<16x128xf32>
      %65 = arith.truncf %64 : vector<16x128xf32> to vector<16x128xbf16>
      %c0_48 = arith.constant 0 : index
      %c0_49 = arith.constant 0 : index
      %c0_50 = arith.constant 0 : index
      %66 = vector.load %arg12[%c0_48, %c0_49, %c0_50] : memref<1x16x128xbf16, #tpu.memory_space<vmem>>, vector<1x16x128xbf16>
      %67 = vector.shape_cast %66 : vector<1x16x128xbf16> to vector<16x128xbf16>
      %68 = vector.shape_cast %65 : vector<16x128xbf16> to vector<1x16x128xbf16>
      tpu.vector_store %arg12[%c0_48, %c0_49, %c0_50], %68 {strides = array<i32>} : memref<1x16x128xbf16, #tpu.memory_space<vmem>>, vector<1x16x128xbf16>,
    } else {
    }
    return
  }
  func.func @transform_0(%arg0: i32, %arg1: i32, %arg2: i32, %arg3: memref<2xi32, #tpu.memory_space<smem>>) -> (i32, i32, i32) {
    %c0_i32 = arith.constant 0 : i32
    %c0_i32_0 = arith.constant 0 : i32
    return %arg0, %arg1, %c0_i32 : i32, i32, i32
  }
  func.func @transform_1(%arg0: i32, %arg1: i32, %arg2: i32, %arg3: memref<2xi32, #tpu.memory_space<smem>>) -> (i32, i32) {
    %c0_i32 = arith.constant 0 : i32
    %c0_i32_0 = arith.constant 0 : i32
    return %c0_i32, %arg2 : i32, i32
  }
  func.func @transform_2(%arg0: i32, %arg1: i32, %arg2: i32, %arg3: memref<2xi32, #tpu.memory_space<smem>>) -> (i32, i32) {
    %c0_i32 = arith.constant 0 : i32
    %c0_i32_0 = arith.constant 0 : i32
    return %c0_i32, %arg2 : i32, i32
  }
  func.func @transform_3(%arg0: i32, %arg1: i32, %arg2: i32, %arg3: memref<2xi32, #tpu.memory_space<smem>>) -> (i32, i32) {
    %c0_i32 = arith.constant 0 : i32
    %c0_i32_0 = arith.constant 0 : i32
    return %arg2, %c0_i32 : i32, i32
  }
  func.func @transform_4(%arg0: i32, %arg1: i32, %arg2: i32, %arg3: memref<2xi32, #tpu.memory_space<smem>>) -> (i32, i32, i32) {
    %0 = arith.index_cast %arg0 : i32 to index
    %1 = memref.load %arg3[%0] : memref<2xi32, #tpu.memory_space<smem>>
    %c0_i32 = arith.constant 0 : i32
    %c0_i32_0 = arith.constant 0 : i32
    return %1, %c0_i32, %arg2 : i32, i32, i32
  }
  func.func @transform_5(%arg0: i32, %arg1: i32, %arg2: i32, %arg3: memref<2xi32, #tpu.memory_space<smem>>) -> (i32, i32, i32) {
    %0 = arith.index_cast %arg0 : i32 to index
    %1 = memref.load %arg3[%0] : memref<2xi32, #tpu.memory_space<smem>>
    %c0_i32 = arith.constant 0 : i32
    %c0_i32_0 = arith.constant 0 : i32
    return %1, %c0_i32, %arg2 : i32, i32, i32
  }
  func.func @transform_6(%arg0: i32, %arg1: i32, %arg2: i32, %arg3: memref<2xi32, #tpu.memory_space<smem>>) -> (i32, i32, i32) {
    %0 = arith.index_cast %arg0 : i32 to index
    %1 = memref.load %arg3[%0] : memref<2xi32, #tpu.memory_space<smem>>
    %c0_i32 = arith.constant 0 : i32
    %c0_i32_0 = arith.constant 0 : i32
    return %1, %arg2, %c0_i32 : i32, i32, i32
  }
  func.func @transform_7(%arg0: i32, %arg1: i32, %arg2: i32, %arg3: memref<2xi32, #tpu.memory_space<smem>>) -> (i32, i32, i32) {
    %c0_i32 = arith.constant 0 : i32
    %c0_i32_0 = arith.constant 0 : i32
    return %arg0, %arg1, %c0_i32 : i32, i32, i32
  }
  func.func @transform_8(%arg0: i32, %arg1: i32, %arg2: i32, %arg3: memref<2xi32, #tpu.memory_space<smem>>) -> (i32, i32, i32) {
    %c0_i32 = arith.constant 0 : i32
    %c0_i32_0 = arith.constant 0 : i32
    return %arg0, %arg1, %c0_i32 : i32, i32, i32
  }
}

</mosaic_0001>

<bundles_post_ra>
// kernel: mta_sharemoe_forward.1
= control target key start
LH: loop header
LB: loop body
LE: loop exit
PB: predicated region body
PF: predicated region fallthrough
CT: control target
= control target key end

     0   :  { %s3338_s0 = inlined_call_operand.vmem [shape: s32[2], index: 0, kind: input, shape index: {}]   ;;  %s3339_s1 = inlined_call_operand.vmem [shape: bf16[2,16,128], index: 1, kind: input, shape index: {}]   ;;  %s3340_s2 = inlined_call_operand.hbm [shape: bf16[128,256], index: 2, kind: input, shape index: {}]   ;;  %s3341_s3 = inlined_call_operand.hbm [shape: bf16[128,256], index: 3, kind: input, shape index: {}]   ;;  %s3342_s4 = inlined_call_operand.hbm [shape: bf16[256,128], index: 4, kind: input, shape index: {}]   ;;  %s3343_s5 = inlined_call_operand.hbm [shape: bf16[5,128,256], index: 5, kind: input, shape index: {}]   ;;  %s3344_s6 = inlined_call_operand.hbm [shape: bf16[5,128,256], index: 6, kind: input, shape index: {}]   ;;  %s3345_s7 = inlined_call_operand.hbm [shape: bf16[5,256,128], index: 7, kind: input, shape index: {}]   ;;  %s3346_s8 = inlined_call_operand.vmem [shape: bf16[2,16,128], index: 8, kind: output, shape index: {0}]   ;;  %s3347_s9 = inlined_call_operand.vmem [shape: bf16[2,16,128], index: 9, kind: output, shape index: {1}]  }
   0x1   :  { %3374 = sst [smem:[#allocation35_spill]] %s3339_s1  ;;  %s15_s11 = sshll.u32 %s3338_s0, 4  ;;  %s16_s11 = int_to_ptr.vmem [resolvable:$true] %s15_s11 }
   0x2   :  { %3375 = sst [smem:[#allocation36_spill]] %s3341_s3  ;;  %s2387_s12 = scalar_lea.vmem %s16_s11, 16 }
   0x3   :  { %3376 = sst [smem:[#allocation37_spill]] %s3344_s6  ;;  %p2388_p0 = scmp.ne.s32.totalorder %s16_s11, %s2387_s12 }
   0x4   :  { %3377 = sst [smem:[#allocation38_spill]] %s3345_s7  ;;  %p2392_p1 = scmp.lt.s32.totalorder %s16_s11, %s16_s11 }
   0x5   :  { %3378 = sst [smem:[#allocation39_spill]] %s3346_s8  ;;  %p2393_p2 = scmp.lt.s32.totalorder %s2387_s12, %s2387_s12 }
   0x6   :  { %3379 = sst [smem:[#allocation40_spill]] %s3347_s9 }
   0x7   :  { %p2394_p3 = por %p2393_p2, %p2392_p1 }
   0x9   :  { %p2395_p4 = pnand %p2394_p3, %p2388_p0 }
   0xb   :  { %2398 = shalt.err (!%p2395_p4)  }
   0xc   :  { %s2691_s13 = smov [#allocation5]  }
   0xd   :  { %18 = dma.vmem_to_smem %s16_s11, 16, %s2691_s13, [#allocation4] }
   0xe   :  { %2621 = dma.done.wait [#allocation4], 16 }
   0xf   :  { %2622 = vsyncadd [#allocation4], 4294967280 }
  0x10   :  { %20 = sfence }
  0x11   :  { %21 = vsyncpa [#allocation7], 0 }
  0x12   :  { %22 = vsyncpa [#allocation9], 0 }
  0x13   :  { %23 = vsyncpa [#allocation12], 0 }
  0x14   :  { %25 = vsyncpa [#allocation12 + $0x1], 0 }
  0x15   :  { %26 = vsyncpa [#allocation15], 0 }
  0x16   :  { %28 = vsyncpa [#allocation15 + $0x1], 0  ;;  %s2756_s0 = smov 0   ;;  %s2758_s14 = smov 0  }
  0x17   :  { %s2760_s15 = smov 0   ;;  %s2762_s16 = smov 0  }
  0x18   :  { %s2764_s17 = smov 0   ;;  %s2766_s18 = smov 0  }
  0x19   :  { %s2768_s19 = smov 0   ;;  %s2770_s20 = smov 0  }
  0x1a   :  { %s2772_s21 = smov 0   ;;  %s2774_s22 = smov 0  }
  0x1b   :  { %s2776_s23 = smov 0   ;;  %s2778_s24 = smov 0  }
  0x1c LB: > { %3380 = sst [smem:[#allocation28_spill]] %s2645_s0  ;;  %s3348_s25 = sadd.s32 4294967295, %s2689_s24   ;;  %s2689_s24 = sphi %s2778_s24, %s34_s24   ;;  %s2685_s23 = sphi %s2776_s23, %s3449_s23   ;;  %s2681_s22 = sphi %s2774_s22, %s3448_s22   ;;  %s2677_s21 = sphi %s2772_s21, %s3441_s21   ;;  %s2673_s20 = sphi %s2770_s20, %s3440_s20   ;;  %s2669_s19 = sphi %s2768_s19, %s3439_s19   ;;  %s2665_s18 = sphi %s2766_s18, %s3447_s18   ;;  %s2661_s17 = sphi %s2764_s17, %s3446_s17   ;;  %s2657_s16 = sphi %s2762_s16, %s3445_s16   ;;  %s2653_s15 = sphi %s2760_s15, %s3444_s15   ;;  %s2649_s14 = sphi %s2758_s14, %s3443_s14   ;;  %s2645_s0 = sphi %s2756_s0, %s3442_s0  }
  0x1d   : > { %3381 = sst [smem:[#allocation29_spill]] %s2673_s20  ;;  %p1886_p5 = scmp.ge.s32.totalorder %s2689_s24, 1 }
  0x1e   : > { %3382 = sst [smem:[#allocation30_spill]] %s2677_s21  ;;  %p2820_p6 = scmp.eq.s32.totalorder %s3348_s25, 0 }
  0x1f   : > { %3383 = sst [smem:[#allocation31_spill]] %s2681_s22  ;;  %p310_p7 = scmp.lt.s32.totalorder %s2689_s24, 3 }
  0x20   : > { %s3384_s26 = scalar_select %p2820_p6, 1, 0 }
  0x21   : > { %p2825_p8 = pnand %p1886_p5, %p310_p7  ;;  %s2692_s28 = smov [#allocation8]  }
  0x22   : > { %s341_s29 = sshll.u32 %s2692_s28, 4  ;;  %s3388_s3 = sld [smem:[#allocation36_spill]]  ;;  %s342_s29 = int_to_ptr.vmem [resolvable:$true] %s341_s29 }
  0x23   : > { %s3385_s27 = scalar_select %p2825_p8, 1, 0 }
  0x24   : > { %p2104_p9 = pneg %p2825_p8 }
  0x25   : > { %3386 = sst [smem:[#allocation32_spill]] %s3385_s27 }
  0x26   : > { %p2834_p11 = pnand %p2104_p9, %p2820_p6 }
  0x28   : > { %s2399_s12 = scalar_lea.hbm %s3388_s3, 2048  ;;  %p2846_p13 = pneg %p2834_p11 }
  0x29   : > { %p2400_p12 = scmp.ne.s32.totalorder %s3388_s3, %s2399_s12  ;;  %p2406_p2 = scmp.lt.u32.totalorder %s2399_s12, %s3388_s3 }
  0x2b   : > { %p2402_p0 = pnand %p2846_p13, %p2400_p12 }
  0x2d   : > { %p2403_p1 = pneg %p2402_p0 }
  0x2f   : > { %p2408_p3 = pnand %p2406_p2, %p2403_p1 }
  0x31   : > { %2411 = shalt.err (!%p2408_p3)
}
  0x32   : > { %s2412_s10 = scalar_lea.vmem %s342_s29, 2048  ;;  %p2420_p9 = scmp.lt.s32.totalorder %s342_s29, %s342_s29 }
  0x33   : > { %p2413_p4 = scmp.ne.s32.totalorder %s342_s29, %s2412_s10  ;;  %p2421_p10 = scmp.lt.s32.totalorder %s2412_s10, %s2412_s10 }
  0x35   : > { %p2415_p5 = pnand %p2413_p4, %p2846_p13  ;;  %p2422_p8 = por %p2421_p10, %p2420_p9 }
  0x37   : > { %p2416_p7 = pneg %p2415_p5 }
  0x39   : > { %p2423_p6 = pnand %p2422_p8, %p2416_p7 }
  0x3b   : > { %2426 = shalt.err (!%p2423_p6)
}
  0x3c   : > { %s3354_s25 = smov 128   ;;  %s3356_s8 = smov 8  }
  0x3d   : > { %2110 = dma.hbm_to_vmem [thread:$0]  (!%p2834_p11), %s3388_s3, 2048, %s342_s29, [#allocation9], %s3354_s25, %s3354_s25, %s3356_s8  }
  0x3e   : > { %s53_s12 = sadd.s32 1, %s2685_s23  ;;  %s163_s13 = sld [smem:[#allocation5 + %s2685_s23]] }
  0x3f   : > { %p55_p6 = scmp.ge.s32.totalorder %s53_s12, 2  ;;  %s170_s10 = sadd.s32 1, %s2677_s21 }
  0x40   : > { %p177_p8 = scmp.ne.s32.totalorder %s2677_s21, %s2673_s20  ;;  %p3366_p10 = scmp.eq.s32.totalorder %s2689_s24, 0 }
  0x41   : > { %s3451_s12 = smov (%p55_p6, %s53_s12), 0  ;;  %p183_p0 = scmp.ne.s32.totalorder %s2673_s20, %s2669_s19 }
  0x42   : > { %p2875_p12 = por %p3366_p10, %p177_p8  ;;  %s164_s29 = sld [smem:[#allocation5 + %s3451_s12]] }
  0x43   : > { %p3391_p1 = scmp.ne.s32.totalorder %s3384_s26, 0  ;;  %s386_s25 = sand.u32 1, %s2677_s21  }
  0x44   : > { %p3394_p3 = scmp.lt.s32.totalorder %s2689_s24, 2  ;;  %s1891_s3 = sshll.u32 %s386_s25, 7 }
  0x45   : > { %p2885_p2 = por %p3391_p1, %p183_p0  ;;  %s388_s20 = scalar_lea.vmem [#allocation11], %s1891_s3 }
  0x46   : > { %p2894_p4 = pnand %p3394_p3, %p2875_p12  ;;  %s398_s27 = sshll.u32 %s388_s20, 4  ;;  %s2900_s27 = int_to_ptr.vmem [resolvable:$true] %s398_s27 }
  0x47   : > { %s3392_s11 = scalar_select %p2885_p2, 1, 0 }
  0x48   : > { %s3395_s8 = scalar_select %p2894_p4, 1, 0 }
  0x49   : > { %3393 = sst [smem:[#allocation33_spill]] %s3392_s11  ;;  %s165_s19 = ssub.s32 %s163_s13, %s164_s29 }
  0x4a   : > { %s2086_s22 = scalar_select %p2875_p12, [#allocation5], [#allocation16] }
  0x4b   : > { %p168_p5 = scmp.eq.s32.totalorder %s165_s19, 0  ;;  %p3397_p7 = pmov %p3394_p3 }
  0x4c   : > { %s2087_s9 = scalar_select %p2875_p12, %s2685_s23, 0 }
  0x4d   : > { %s2906_s11 = scalar_select %p168_p5, %s2677_s21, %s170_s10  }
  0x4e   : > { %s3453_s22 = smov (!%p3397_p7, %s2086_s22), [#allocation19]  ;;  %p3398_p9 = pmov %p3394_p3 }
  0x4f   : > { %3396 = sst [smem:[#allocation34_spill]] %s2906_s11  ;;  %s2695_s25 = smov [#allocation6]  }
  0x50   : > { %s3455_s9 = smov (!%p3398_p9, %s2087_s9), 0  ;;  %s325_s6 = sshll.u32 %s2695_s25, 4  ;;  %s326_s6 = int_to_ptr.vmem [resolvable:$true] %s325_s6 }
  0x51   : > { %s2912_s7 = sld [smem:[%s3453_s22 + %s3455_s9]]  ;;  %s2427_s3 = scalar_lea.hbm %s3340_s2, 2048 }
  0x52   : > { %p2428_p6 = scmp.ne.s32.totalorder %s3340_s2, %s2427_s3  ;;  %p2434_p0 = scmp.lt.u32.totalorder %s2427_s3, %s3340_s2 }
  0x54   : > { %p2430_p8 = pnand %p2428_p6, %p2846_p13 }
  0x56   : > { %p2431_p12 = pneg %p2430_p8 }
  0x58   : > { %p2436_p3 = pnand %p2434_p0, %p2431_p12 }
  0x5a   : > { %2439 = shalt.err (!%p2436_p3)
}
  0x5b   : > { %s2440_s22 = scalar_lea.vmem %s326_s6, 2048  ;;  %p2448_p10 = scmp.lt.s32.totalorder %s326_s6, %s326_s6 }
  0x5c   : > { %p2441_p5 = scmp.ne.s32.totalorder %s326_s6, %s2440_s22  ;;  %p2449_p2 = scmp.lt.s32.totalorder %s2440_s22, %s2440_s22 }
  0x5e   : > { %p2443_p7 = pnand %p2441_p5, %p2846_p13  ;;  %p2450_p1 = por %p2449_p2, %p2448_p10 }
  0x60   : > { %p2444_p9 = pneg %p2443_p7 }
  0x62   : > { %p2451_p4 = pnand %p2450_p1, %p2444_p9 }
  0x64   : > { %2454 = shalt.err (!%p2451_p4)
}
  0x65   : > { %s3399_s0 = smov 8   ;;  %s3400_s9 = smov 128  }
  0x66   : > { %2107 = dma.hbm_to_vmem [thread:$0]  (!%p2834_p11), %s3340_s2, 2048, %s326_s6, [#allocation7], %s3400_s9, %s3400_s9, %s3399_s0  }
  0x67   : > { %s2696_s13 = smov [#allocation10]   ;;  %s2455_s1 = scalar_lea.hbm %s3342_s4, 2048 }
  0x68   : > { %s357_s3 = sshll.u32 %s2696_s13, 4  ;;  %p2456_p10 = scmp.ne.s32.totalorder %s3342_s4, %s2455_s1  ;;  %s358_s3 = int_to_ptr.vmem [resolvable:$true] %s357_s3 }
  0x69   : > { %p2462_p4 = scmp.lt.u32.totalorder %s2455_s1, %s3342_s4 }
  0x6a   : > { %p2458_p1 = pnand %p2456_p10, %p2846_p13 }
  0x6c   : > { %p2459_p2 = pneg %p2458_p1 }
  0x6e   : > { %p2464_p6 = pnand %p2462_p4, %p2459_p2 }
  0x70   : > { %2467 = shalt.err (!%p2464_p6)
}
  0x71   : > { %s2468_s6 = scalar_lea.vmem %s358_s3, 2048  ;;  %p2476_p3 = scmp.lt.s32.totalorder %s358_s3, %s358_s3 }
  0x72   : > { %p2469_p8 = scmp.ne.s32.totalorder %s358_s3, %s2468_s6  ;;  %p2477_p5 = scmp.lt.s32.totalorder %s2468_s6, %s2468_s6 }
  0x74   : > { %p2471_p12 = pnand %p2469_p8, %p2846_p13  ;;  %p2478_p7 = por %p2477_p5, %p2476_p3 }
  0x76   : > { %p2472_p0 = pneg %p2471_p12 }
  0x78   : > { %p2479_p9 = pnand %p2478_p7, %p2472_p0 }
  0x7a   : > { %2482 = shalt.err (!%p2479_p9)
}
  0x7b   : > { %s3370_s19 = smov 64   ;;  %s3371_s21 = smov 4  }
  0x7c   : > { %2113 = dma.hbm_to_vmem [thread:$0]  (!%p2834_p11), %s3342_s4, 2048, %s358_s3, [#allocation9], %s3370_s19, %s3370_s19, %s3371_s21  }
  0x7d   : > { %s2016_s25 = sshll.u32 %s2912_s7, 11  ;;  %s3401_s1 = sand.u32 1, %s2689_s24  }
  0x7e   : > { %s2960_s29 = scalar_lea.hbm %s3343_s5, %s2016_s25  ;;  %s2964_s10 = scalar_lea.sflag [#allocation12], %s3401_s1 }
  0x7f   : > { %s2483_s30 = scalar_lea.hbm %s2960_s29, 2048  ;;  %p3402_p10 = scmp.ne.s32.totalorder %s3395_s8, 0 }
  0x80   : > { %p2484_p13 = scmp.ne.s32.totalorder %s2960_s29, %s2483_s30  ;;  %s2488_s22 = scalar_lea.hbm %s3343_s5, 10240 }
  0x81   : > { %p2485_p1 = pneg %p3402_p10  ;;  %p2489_p4 = scmp.lt.u32.totalorder %s2960_s29, %s3343_s5 }
  0x82   : > { %p2490_p6 = scmp.lt.u32.totalorder %s2488_s22, %s2483_s30  ;;  %p2492_p12 = scmp.lt.u32.totalorder %s2483_s30, %s2960_s29 }
  0x83   : > { %p2486_p11 = pnand %p2485_p1, %p2484_p13 }
  0x84   : > { %p2491_p8 = por %p2490_p6, %p2489_p4 }
  0x85   : > { %p2487_p2 = pneg %p2486_p11 }
  0x86   : > { %p2493_p0 = por %p2492_p12, %p2491_p8 }
  0x88   : > { %p2494_p3 = pnand %p2493_p0, %p2487_p2 }
  0x8a   : > { %2497 = shalt.err (!%p2494_p3)
}
  0x8b   : > { %s2498_s28 = scalar_lea.vmem %s2900_s27, 2048  ;;  %s2699_s25 = smov [#allocation11]  }
  0x8c   : > { %p2499_p5 = scmp.ne.s32.totalorder %s2900_s27, %s2498_s28  ;;  %s2503_s13 = sshll.u32 %s2699_s25, 4  ;;  %s2504_s13 = int_to_ptr.vmem [resolvable:$false] %s2503_s13 }
  0x8d   : > { %s2505_s20 = scalar_lea.vmem %s2504_s13, 4096  ;;  %p2506_p13 = scmp.lt.s32.totalorder %s2900_s27, %s2504_s13 }
  0x8e   : > { %p2501_p7 = pnand %p2499_p5, %p2485_p1  ;;  %p2507_p11 = scmp.lt.s32.totalorder %s2505_s20, %s2498_s28 }
  0x90   : > { %p2502_p9 = pneg %p2501_p7  ;;  %p2508_p4 = por %p2507_p11, %p2506_p13 }
  0x92   : > { %p2509_p6 = pnand %p2508_p4, %p2502_p9 }
  0x94   : > { %2512 = shalt.err (!%p2509_p6)
}
  0x95   : > { %2119 = dma.hbm_to_vmem [thread:$0]  (!%p3402_p10), %s2960_s29, 2048, %s2900_s27, %s2964_s10, %s3400_s9, %s3400_s9, %s3399_s0  }
  0x96   : > { %s193_s8 = sld [smem:[#allocation5 + %s2685_s23]]  ;;  %p207_p1 = scmp.ne.s32.totalorder %s2665_s18, %s2661_s17 }
  0x97   : > { %s194_s1 = sld [smem:[#allocation5 + %s3451_s12]]  ;;  %p213_p2 = scmp.ne.s32.totalorder %s2661_s17, %s2657_s16 }
  0x98   : > { %s410_s30 = sand.u32 1, %s2665_s18   ;;  %p3403_p8 = scmp.eq.s32.totalorder %s2689_s24, 0 }
  0x99   : > { %s1894_s3 = sshll.u32 %s410_s30, 7  ;;  %p3405_p10 = scmp.ne.s32.totalorder %s3384_s26, 0 }
  0x9a   : > { %p3004_p12 = por %p207_p1, %p3403_p8  ;;  %s3407_s29 = sld [smem:[#allocation28_spill]] }
  0x9b   : > { %p3010_p0 = por %p213_p2, %p3405_p10  ;;  %s200_s6 = sadd.s32 1, %s2665_s18 }
  0x9c   : > { %s2089_s16 = scalar_select %p3004_p12, [#allocation5], [#allocation17] }
  0x9d   : > { %s3406_s27 = scalar_select %p3010_p0, 1, 0 }
  0x9e   : > { %s195_s22 = ssub.s32 %s193_s8, %s194_s1  ;;  %s412_s11 = scalar_lea.vmem [#allocation13], %s1894_s3 }
  0x9f   : > { %p198_p3 = scmp.eq.s32.totalorder %s195_s22, 0  ;;  %s422_s28 = sshll.u32 %s412_s11, 4  ;;  %s3038_s28 = int_to_ptr.vmem [resolvable:$true] %s422_s28 }
  0xa0   : > { %s2090_s25 = scalar_select %p3004_p12, %s2685_s23, 0 }
  0xa1   : > { %s3021_s13 = scalar_select %p198_p3, %s2665_s18, %s200_s6  }
  0xa2   : > { %p3408_p5 = scmp.lt.s32.totalorder %s2689_s24, 2  ;;  %s3036_s1 = sld [smem:[#allocation5 + %s2685_s23]] }
  0xa3   : > { %s3041_s30 = sld [smem:[#allocation5 + %s3451_s12]]  ;;  %p237_p11 = scmp.ne.s32.totalorder %s2653_s15, %s2649_s14 }
  0xa4   : > { %s3457_s16 = smov (!%p3408_p5, %s2089_s16), [#allocation20]  ;;  %p3409_p7 = pmov %p3408_p5 }
  0xa5   : > { %p3410_p9 = pmov %p3408_p5  ;;  %s3412_s11 = sld [smem:[#allocation37_spill]] }
  0xa6   : > { %s3459_s25 = smov (!%p3409_p7, %s2090_s25), 0  ;;  %p3413_p6 = pmov %p3403_p8 }
  0xa7   : > { %p3031_p13 = pnand %p3410_p9, %p3004_p12  ;;  %s413_s8 = sld [smem:[%s3457_s16 + %s3459_s25]] }
  0xa8   : > { %p3055_p1 = por %p237_p11, %p3413_p6 }
  0xa9   : > { %p2515_p8 = pneg %p3031_p13 }
  0xaa   : > { %s3414_s16 = scalar_select %p3055_p1, 1, 0 }
  0xab   : > { %s2518_s6 = scalar_lea.hbm %s3412_s11, 10240 }
  0xad   : > { %s2017_s3 = sshll.u32 %s413_s8, 11 }
  0xae   : > { %s3051_s19 = scalar_lea.hbm %s3412_s11, %s2017_s3 }
  0xaf   : > { %s2513_s25 = scalar_lea.hbm %s3051_s19, 2048  ;;  %p2519_p5 = scmp.lt.u32.totalorder %s3051_s19, %s3412_s11 }
  0xb0   : > { %p2514_p2 = scmp.ne.s32.totalorder %s3051_s19, %s2513_s25  ;;  %p2520_p7 = scmp.lt.u32.totalorder %s2518_s6, %s2513_s25 }
  0xb1   : > { %p2522_p11 = scmp.lt.u32.totalorder %s2513_s25, %s3051_s19 }
  0xb2   : > { %p2516_p12 = pnand %p2515_p8, %p2514_p2  ;;  %p2521_p9 = por %p2520_p7, %p2519_p5 }
  0xb4   : > { %p2517_p3 = pneg %p2516_p12  ;;  %p2523_p6 = por %p2522_p11, %p2521_p9 }
  0xb6   : > { %p2524_p4 = pnand %p2523_p6, %p2517_p3 }
  0xb8   : > { %2527 = shalt.err (!%p2524_p4)
}
  0xb9   : > { %s2528_s22 = scalar_lea.vmem %s3038_s28, 2048  ;;  %s2700_s8 = smov [#allocation13]  }
  0xba   : > { %p2529_p2 = scmp.ne.s32.totalorder %s3038_s28, %s2528_s22  ;;  %s2533_s3 = sshll.u32 %s2700_s8, 4  ;;  %s2534_s3 = int_to_ptr.vmem [resolvable:$false] %s2533_s3 }
  0xbb   : > { %s2535_s21 = scalar_lea.vmem %s2534_s3, 4096  ;;  %p2536_p1 = scmp.lt.s32.totalorder %s3038_s28, %s2534_s3 }
  0xbc   : > { %p2531_p12 = pnand %p2529_p2, %p2515_p8  ;;  %p2537_p5 = scmp.lt.s32.totalorder %s2535_s21, %s2528_s22 }
  0xbe   : > { %p2532_p0 = pneg %p2531_p12  ;;  %p2538_p7 = por %p2537_p5, %p2536_p1 }
  0xc0   : > { %p2539_p9 = pnand %p2538_p7, %p2532_p0 }
  0xc2   : > { %2542 = shalt.err (!%p2539_p9)
}
  0xc3   : > { %2124 = dma.hbm_to_vmem [thread:$0]  (!%p3031_p13), %s3051_s19, 2048, %s3038_s28, %s2964_s10, %s3400_s9, %s3400_s9, %s3399_s0  }
  0xc4   : > { %p3415_p0 = scmp.ne.s32.totalorder %s2649_s14, %s3407_s29  ;;  %s225_s22 = ssub.s32 %s3036_s1, %s3041_s30 }
  0xc5   : > { %s230_s25 = sadd.s32 1, %s2653_s15  ;;  %p228_p1 = scmp.eq.s32.totalorder %s225_s22, 0 }
  0xc6   : > { %p3093_p4 = por %p3415_p0, %p3405_p10  ;;  %s3417_s6 = sand.u32 1, %s2653_s15  }
  0xc7   : > { %s1897_s7 = sshll.u32 %s3417_s6, 7  ;;  %p3418_p8 = scmp.ne.s32.totalorder %s3414_s16, 0 }
  0xc8   : > { %s3105_s3 = scalar_select %p228_p1, %s2653_s15, %s230_s25  }
  0xc9   : > { %s2092_s8 = scalar_select %p3418_p8, [#allocation5], [#allocation18] }
  0xca   : > { %s2093_s21 = scalar_select %p3418_p8, %s2685_s23, 0 }
  0xcb   : > { %p3419_p3 = scmp.lt.s32.totalorder %s2689_s24, 2  ;;  %s436_s19 = scalar_lea.vmem [#allocation14], %s1897_s7 }
  0xcc   : > { %s446_s10 = sshll.u32 %s436_s19, 4  ;;  %s3423_s30 = sld [smem:[#allocation38_spill]]  ;;  %s3122_s10 = int_to_ptr.vmem [resolvable:$true] %s446_s10 }
  0xcd   : > { %s3461_s8 = smov (!%p3419_p3, %s2092_s8), [#allocation21]  ;;  %p3420_p13 = pmov %p3419_p3 }
  0xce   : > { %p3421_p10 = pmov %p3419_p3  ;;  %s3424_s25 = smov %s3417_s6 }
  0xcf   : > { %s3463_s21 = smov (!%p3420_p13, %s2093_s21), 0  ;;  %s3131_s16 = scalar_lea.sflag [#allocation15], %s3424_s25 }
  0xd0   : > { %p3118_p11 = pnand %p3421_p10, %p3418_p8  ;;  %s437_s9 = sld [smem:[%s3461_s8 + %s3463_s21]] }
  0xd2   : > { %p2545_p2 = pneg %p3118_p11  ;;  %s2548_s21 = scalar_lea.hbm %s3423_s30, 10240 }
  0xd6   : > { %s2018_s29 = sshll.u32 %s437_s9, 11 }
  0xd7   : > { %s3127_s22 = scalar_lea.hbm %s3423_s30, %s2018_s29 }
  0xd8   : > { %s2543_s6 = scalar_lea.hbm %s3127_s22, 2048  ;;  %p2549_p7 = scmp.lt.u32.totalorder %s3127_s22, %s3423_s30 }
  0xd9   : > { %p2544_p6 = scmp.ne.s32.totalorder %s3127_s22, %s2543_s6  ;;  %p2550_p9 = scmp.lt.u32.totalorder %s2548_s21, %s2543_s6 }
  0xda   : > { %p2552_p1 = scmp.lt.u32.totalorder %s2543_s6, %s3127_s22 }
  0xdb   : > { %p2546_p12 = pnand %p2545_p2, %p2544_p6  ;;  %p2551_p0 = por %p2550_p9, %p2549_p7 }
  0xdd   : > { %p2547_p5 = pneg %p2546_p12  ;;  %p2553_p8 = por %p2552_p1, %p2551_p0 }
  0xdf   : > { %p2554_p3 = pnand %p2553_p8, %p2547_p5 }
  0xe1   : > { %2557 = shalt.err (!%p2554_p3)
}
  0xe2   : > { %s2558_s29 = scalar_lea.vmem %s3122_s10, 2048  ;;  %s2701_s28 = smov [#allocation14]  }
  0xe3   : > { %p2559_p13 = scmp.ne.s32.totalorder %s3122_s10, %s2558_s29  ;;  %s2563_s1 = sshll.u32 %s2701_s28, 4  ;;  %s2564_s1 = int_to_ptr.vmem [resolvable:$false] %s2563_s1 }
  0xe4   : > { %s2565_s25 = scalar_lea.vmem %s2564_s1, 4096  ;;  %p2566_p12 = scmp.lt.s32.totalorder %s3122_s10, %s2564_s1 }
  0xe5   : > { %p2561_p10 = pnand %p2559_p13, %p2545_p2  ;;  %p2567_p7 = scmp.lt.s32.totalorder %s2565_s25, %s2558_s29 }
  0xe7   : > { %p2562_p6 = pneg %p2561_p10  ;;  %p2568_p9 = por %p2567_p7, %p2566_p12 }
  0xe9   : > { %p2569_p0 = pnand %p2568_p9, %p2562_p6 }
  0xeb   : > { %2572 = shalt.err (!%p2569_p0)
}
  0xec   : > { %s3425_s6 = smov 4   ;;  %s3426_s7 = smov 64  }
  0xed   : > { %2129 = dma.hbm_to_vmem [thread:$0]  (!%p3118_p11), %s3127_s22, 2048, %s3122_s10, %s3131_s16, %s3426_s7, %s3426_s7, %s3425_s6  }
  0xee   : > { %s3427_s8 = sld [smem:[#allocation32_spill]] }
  0xf4   : > { %p3428_p2 = scmp.ne.s32.totalorder %s3427_s8, 0 }
  0xf5   : > { %p3429_p5 = scmp.ne.s32.totalorder (!%p3428_p2), %s3384_s26, 0 }
  0xf6   : > { %458 = sbr.rel (%p3428_p2) target bundleno = 1025 (0x401), region = 48 }
  0xfd   : > { %2624 = dma.done.wait (%p3429_p5), [#allocation7], 2048  }
  0xfe   : > { %2626 = vsyncadd (%p3429_p5), [#allocation7], 4294965248 }
  0xff   : > { %2628 = dma.done.wait (%p3429_p5), [#allocation9], 4096  }
 0x100   : > { %2630 = vsyncadd (%p3429_p5), [#allocation9], 4294963200  ;;  %s3430_s0 = sadd.s32 4294967295, %s2689_s24   ;;  %s3431_s21 = sld [smem:[#allocation29_spill]] }
 0x101   : > { %s3432_s9 = sld [smem:[#allocation33_spill]]  ;;  %s472_s10 = sand.u32 1, %s3430_s0  }
 0x102   : > { %s473_s19 = scalar_lea.sflag [#allocation12], %s472_s10 }
 0x106   : > { %s474_s22 = sand.u32 1, %s3431_s21  }
 0x107   : > { %s1904_s16 = sshll.u32 %s474_s22, 7  ;;  %p3433_p11 = scmp.ne.s32.totalorder %s3432_s9, 0 }
 0x108   : > { %s3175_s29 = scalar_lea.vmem [#allocation11], %s1904_s16 }
 0x109   : > { %2632 = dma.done.wait (%p3433_p11), %s473_s19, 2048  }
 0x10a   : > { %2634 = vsyncadd (%p3433_p11), %s473_s19, 4294965248  ;;  %s483_s28 = sand.u32 1, %s2661_s17   ;;  %p3434_p1 = scmp.ne.s32.totalorder %s3406_s27, 0 }
 0x10b   : > { %s1905_s26 = sshll.u32 %s483_s28, 7 }
 0x10c   : > { %s3182_s1 = scalar_lea.vmem [#allocation13], %s1905_s26 }
 0x10d   : > { %2636 = dma.done.wait (%p3434_p1), %s473_s19, 2048  }
 0x10e   : > { %2638 = vsyncadd (%p3434_p1), %s473_s19, 4294965248  ;;  %s490_s25 = sand.u32 1, %s2649_s14  }
 0x10f   : > { %s1906_s6 = sshll.u32 %s490_s25, 7  ;;  %s491_s7 = scalar_lea.sflag [#allocation15], %s490_s25 }
 0x110   : > { %s3189_s8 = scalar_lea.vmem [#allocation14], %s1906_s6 }
 0x111   : > { %2640 = dma.done.wait (%p3093_p4), %s491_s7, 2048  }
 0x112   : > { %2642 = vsyncadd (%p3093_p4), %s491_s7, 4294965248  ;;  %s3435_s0 = sld [smem:[#allocation31_spill]]  ;;  %v2702_v0 = vmov 0   ;;  %v2242_v1 = vld [vmem:[#allocation6 + $0x4] ss:$8 sps:$4 sm:$0xff]   ;;  %s3436_s9 = sld [smem:[#allocation35_spill]] }
 0x113   : > { %793 = vmatprep.mubr.bf16.mxu0 %v2702_v0  ;;  %916 = vmatprep.mubr.bf16.mxu1 %v2702_v0  ;;  %v2244_v2 = vld [vmem:[#allocation6] ss:$8 sps:$4 sm:$0xff]   ;;  %v2245_v3 = vld [vmem:[#allocation6 + $0x14] ss:$8 sps:$4 sm:$0xff]   ;;  %v2247_v4 = vld [vmem:[#allocation6 + $0x10] ss:$8 sps:$4 sm:$0xff]  }
 0x114   : > { %761 = vmatprep.subr.bf16.mxu0 %v2242_v1  ;;  %v2248_v5 = vld [vmem:[#allocation6 + $0x24] ss:$8 sps:$4 sm:$0xff]   ;;  %v2250_v6 = vld [vmem:[#allocation6 + $0x20] ss:$8 sps:$4 sm:$0xff]   ;;  %v2251_v7 = vld [vmem:[#allocation6 + $0x34] ss:$8 sps:$4 sm:$0xff]  }
 0x115   : > { %762 = vmatpush1.bf16.msra.mxu0 %v2244_v2  ;;  %v2260_v8 = vld [vmem:[#allocation8 + $0x4] ss:$8 sps:$4 sm:$0xff]   ;;  %v2262_v9 = vld [vmem:[#allocation8] ss:$8 sps:$4 sm:$0xff]   ;;  %v2253_v10 = vld [vmem:[#allocation6 + $0x30] ss:$8 sps:$4 sm:$0xff]  }
 0x116   : > { %763 = vmatprep.subr.bf16.mxu0 %v2245_v3  ;;  %884 = vmatprep.subr.bf16.mxu1 %v2260_v8  ;;  %v2266_v11 = vld [vmem:[#allocation8 + $0x14] ss:$8 sps:$4 sm:$0xff]   ;;  %v2268_v12 = vld [vmem:[#allocation8 + $0x10] ss:$8 sps:$4 sm:$0xff]   ;;  %v2254_v13 = vld [vmem:[#allocation6 + $0x44] ss:$8 sps:$4 sm:$0xff]  }
 0x117   : > { %885 = vmatpush1.bf16.msra.mxu1 %v2262_v9  ;;  %v2256_v14 = vld [vmem:[#allocation6 + $0x40] ss:$8 sps:$4 sm:$0xff]   ;;  %v2272_v15 = vld [vmem:[#allocation8 + $0x24] ss:$8 sps:$4 sm:$0xff]   ;;  %v2257_v17 = vld [vmem:[#allocation6 + $0x54] ss:$8 sps:$4 sm:$0xff]  }
 0x118   : > { %p560_p8 = scmp.lt.s32.totalorder %s3435_s0, 1  ;;  %886 = vmatprep.subr.bf16.mxu1 %v2266_v11  ;;  %v2274_v16 = vld [vmem:[#allocation8 + $0x20] ss:$8 sps:$4 sm:$0xff]   ;;  %v2276_v18 = vld [vmem:[#allocation8 + $0x34] ss:$8 sps:$4 sm:$0xff]   ;;  %s3437_s28 = sld [smem:[#allocation39_spill]] }
 0x119   : > { %764 = vmatpush1.bf16.msra.mxu0 %v2247_v4  ;;  %v2259_v19 = vld [vmem:[#allocation6 + $0x50] ss:$8 sps:$4 sm:$0xff]   ;;  %v2263_v21 = vld [vmem:[#allocation6 + $0x64] ss:$8 sps:$4 sm:$0xff]   ;;  %v2265_v23 = vld [vmem:[#allocation6 + $0x60] ss:$8 sps:$4 sm:$0xff]  }
 0x11a   : > { %s3465_s0 = smov (!%p560_p8, %s3435_s0), 1  ;;  %765 = vmatprep.subr.bf16.mxu0 %v2248_v5  ;;  %v2278_v20 = vld [vmem:[#allocation8 + $0x30] ss:$8 sps:$4 sm:$0xff]   ;;  %v2279_v22 = vld [vmem:[#allocation8 + $0x44] ss:$8 sps:$4 sm:$0xff]   ;;  %s3438_s6 = sld [smem:[#allocation40_spill]] }
 0x11b   : > { %s3199_s27 = sshll.u32 %s3465_s0, 3  ;;  %887 = vmatpush1.bf16.msra.mxu1 %v2268_v12  ;;  %v2281_v24 = vld [vmem:[#allocation8 + $0x40] ss:$8 sps:$4 sm:$0xff]   ;;  %v2269_v25 = vld [vmem:[#allocation6 + $0x74] ss:$8 sps:$4 sm:$0xff]  }
 0x11c   : > { %s567_s10 = scalar_lea.vmem %s3436_s9, %s3199_s27  ;;  %888 = vmatprep.subr.bf16.mxu1 %v2272_v15  ;;  %v2282_v26 = vld [vmem:[#allocation8 + $0x54] ss:$8 sps:$4 sm:$0xff]   ;;  %v2271_v27 = vld [vmem:[#allocation6 + $0x70] ss:$8 sps:$4 sm:$0xff]   ;;  %v2285_v29 = vld [vmem:[#allocation8 + $0x64] ss:$8 sps:$4 sm:$0xff]  }
 0x11d   : > { %766 = vmatpush1.bf16.msra.mxu0 %v2250_v6  ;;  %v2284_v28 = vld [vmem:[#allocation8 + $0x50] ss:$8 sps:$4 sm:$0xff]   ;;  %v3210_v30 = vld [vmem:[%s567_s10] sm:$0xff]   ;;  %v2288_v32 = vld [vmem:[#allocation8 + $0x74] ss:$8 sps:$4 sm:$0xff]  }
 0x11e   : > { %767 = vmatprep.subr.bf16.mxu0 %v2251_v7  ;;  %v2287_v31 = vld [vmem:[#allocation8 + $0x60] ss:$8 sps:$4 sm:$0xff]   ;;  %v2290_v33 = vld [vmem:[#allocation8 + $0x70] ss:$8 sps:$4 sm:$0xff]   ;;  %v2293_v34 = vld [vmem:[%s3175_s29 + $0x4] ss:$8 sps:$4 sm:$0xff]   ;;  %s586_s26 = scalar_lea.vmem %s3437_s28, %s3199_s27 }
 0x11f   : > { %889 = vmatpush1.bf16.msra.mxu1 %v2274_v16  ;;  %v2291_v35 = vld [vmem:[%s3175_s29] ss:$8 sps:$4 sm:$0xff]   ;;  %v2296_v36 = vld [vmem:[%s3175_s29 + $0x14] ss:$8 sps:$4 sm:$0xff]   ;;  %v2294_v37 = vld [vmem:[%s3175_s29 + $0x10] ss:$8 sps:$4 sm:$0xff]  }
 0x120   : > { %890 = vmatprep.subr.bf16.mxu1 %v2276_v18  ;;  %v2299_v38 = vld [vmem:[%s3175_s29 + $0x24] ss:$8 sps:$4 sm:$0xff]   ;;  %v2297_v39 = vld [vmem:[%s3175_s29 + $0x20] ss:$8 sps:$4 sm:$0xff]   ;;  %v2302_v40 = vld [vmem:[%s3175_s29 + $0x34] ss:$8 sps:$4 sm:$0xff]   ;;  %s596_s7 = scalar_lea.vmem %s3438_s6, %s3199_s27 }
 0x121   : > { %768 = vmatpush1.bf16.msra.mxu0 %v2253_v10  ;;  %v2300_v41 = vld [vmem:[%s3175_s29 + $0x30] ss:$8 sps:$4 sm:$0xff]   ;;  %v2305_v42 = vld [vmem:[%s3175_s29 + $0x44] ss:$8 sps:$4 sm:$0xff]   ;;  %v2303_v43 = vld [vmem:[%s3175_s29 + $0x40] ss:$8 sps:$4 sm:$0xff]  }
 0x122   : > { %769 = vmatprep.subr.bf16.mxu0 %v2254_v13  ;;  %v2306_v44 = vld [vmem:[#allocation10 + $0x40] sm:$0xff]   ;;  %v2310_v46 = vld [vmem:[%s3175_s29 + $0x54] ss:$8 sps:$4 sm:$0xff]   ;;  %v2308_v47 = vld [vmem:[%s3175_s29 + $0x50] ss:$8 sps:$4 sm:$0xff]  }
 0x123   : > { %891 = vmatpush1.bf16.msra.mxu1 %v2278_v20  ;;  %v2307_v45 = vld [vmem:[#allocation10] sm:$0xff]   ;;  %v2311_v48 = vld [vmem:[#allocation10 + $0x48] sm:$0xff]   ;;  %v2316_v52 = vld [vmem:[#allocation10 + $0x50] sm:$0xff]  }
 0x124   : > { %892 = vmatprep.subr.bf16.mxu1 %v2279_v22  ;;  %v2312_v49 = vld [vmem:[#allocation10 + $0x8] sm:$0xff]   ;;  %v2317_v53 = vld [vmem:[#allocation10 + $0x10] sm:$0xff]   ;;  %v2321_v56 = vld [vmem:[#allocation10 + $0x58] sm:$0xff]  }
 0x125   : > { %770 = vmatpush1.bf16.msra.mxu0 %v2256_v14  ;;  %v2315_v50 = vld [vmem:[%s3175_s29 + $0x64] ss:$8 sps:$4 sm:$0xff]   ;;  %v2313_v51 = vld [vmem:[%s3175_s29 + $0x60] ss:$8 sps:$4 sm:$0xff]   ;;  %v2320_v54 = vld [vmem:[%s3175_s29 + $0x74] ss:$8 sps:$4 sm:$0xff]  }
 0x126   : > { %771 = vmatprep.subr.bf16.mxu0 %v2257_v17  ;;  %v2318_v55 = vld [vmem:[%s3175_s29 + $0x70] ss:$8 sps:$4 sm:$0xff]   ;;  %v2323_v58 = vld [vmem:[#allocation10 + $0x60] sm:$0xff]   ;;  %v2325_v60 = vld [vmem:[#allocation10 + $0x68] sm:$0xff]  }
 0x127   : > { %893 = vmatpush1.bf16.msra.mxu1 %v2281_v24  ;;  %v2322_v57 = vld [vmem:[#allocation10 + $0x18] sm:$0xff]   ;;  %v2324_v59 = vld [vmem:[#allocation10 + $0x20] sm:$0xff]   ;;  %v2326_v61 = vld [vmem:[#allocation10 + $0x28] sm:$0xff]  }
 0x128   : > { %894 = vmatprep.subr.bf16.mxu1 %v2282_v26  ;;  %v2327_v62 = vld [vmem:[#allocation10 + $0x70] sm:$0xff]   ;;  %v2329_v1 = vld [vmem:[#allocation10 + $0x78] sm:$0xff]   ;;  %v2333_v3 = vld [vmem:[%s3182_s1 + $0x4] ss:$8 sps:$4 sm:$0xff]  }
 0x129   : > { %772 = vmatpush1.bf16.msra.mxu0 %v2259_v19  ;;  %v2328_v63 = vld [vmem:[#allocation10 + $0x30] sm:$0xff]   ;;  %v2330_v2 = vld [vmem:[#allocation10 + $0x38] sm:$0xff]  }
 0x12a   : > { %773 = vmatprep.subr.bf16.mxu0 %v2263_v21 }
 0x12b   : > { %895 = vmatpush1.bf16.msra.mxu1 %v2284_v28 }
 0x12c   : > { %896 = vmatprep.subr.bf16.mxu1 %v2285_v29 }
 0x12d   : > { %774 = vmatpush1.bf16.msra.mxu0 %v2265_v23 }
 0x12e   : > { %775 = vmatprep.subr.bf16.mxu0 %v2269_v25 }
 0x12f   : > { %897 = vmatpush1.bf16.msra.mxu1 %v2287_v31 }
 0x130   : > { %898 = vmatprep.subr.bf16.mxu1 %v2288_v32 }
 0x131   : > { %776 = vmatpush1.bf16.msra.mxu0 %v2271_v27 }
 0x132   : > { %2036 = vmatprep.subr.bf16.mxu0 %v2306_v44 }
 0x133   : > { %899 = vmatpush1.bf16.msra.mxu1 %v2290_v33 }
 0x134   : > { %794 = vmatmul.mubr.bf16.vlgmr.msra.gmra.mrb[0].mxu0 %v3210_v30  ;;  %1256 = vmatprep.subr.bf16.mxu1 %v2293_v34 }
 0x135   : > { %2037 = vmatpush3.bf16.msra.mxu0 %v2307_v45 }
 0x136   : > { %917 = vmatmul.mubr.bf16.vlgmr.msra.gmra.mrb[0].mxu1 %v3210_v30  ;;  %2038 = vmatprep.subr.bf16.mxu0 %v2311_v48 }
 0x137   : > { %1257 = vmatpush1.bf16.msra.mxu1 %v2291_v35  ;;  %1288 = vmatprep.mubr.bf16.mxu1 %v2702_v0 }
 0x138   : > { %1258 = vmatprep.subr.bf16.mxu1 %v2296_v36 }
 0x139   : > { %2039 = vmatpush3.bf16.msra.mxu0 %v2312_v49 }
 0x13a   : > { %2040 = vmatprep.subr.bf16.mxu0 %v2316_v52 }
 0x13b   : > { %1259 = vmatpush1.bf16.msra.mxu1 %v2294_v37 }
 0x13c   : > { %1260 = vmatprep.subr.bf16.mxu1 %v2299_v38 }
 0x13d   : > { %2041 = vmatpush3.bf16.msra.mxu0 %v2317_v53 }
 0x13e   : > { %2042 = vmatprep.subr.bf16.mxu0 %v2321_v56  ;;  %v2336_v56 = vld [vmem:[%s3182_s1 + $0x14] ss:$8 sps:$4 sm:$0xff]  }
 0x13f   : > { %1261 = vmatpush1.bf16.msra.mxu1 %v2297_v39 }
 0x140   : > { %1262 = vmatprep.subr.bf16.mxu1 %v2302_v40 }
 0x141   : > { %2043 = vmatpush3.bf16.msra.mxu0 %v2322_v57  ;;  %v2334_v57 = vld [vmem:[%s3182_s1 + $0x10] ss:$8 sps:$4 sm:$0xff]  }
 0x142   : > { %2044 = vmatprep.subr.bf16.mxu0 %v2323_v58  ;;  %v2339_v58 = vld [vmem:[%s3182_s1 + $0x24] ss:$8 sps:$4 sm:$0xff]  }
 0x143   : > { %1263 = vmatpush1.bf16.msra.mxu1 %v2300_v41 }
 0x144   : > { %1264 = vmatprep.subr.bf16.mxu1 %v2305_v42 }
 0x145   : > { %2045 = vmatpush3.bf16.msra.mxu0 %v2324_v59  ;;  %v2337_v59 = vld [vmem:[%s3182_s1 + $0x20] ss:$8 sps:$4 sm:$0xff]  }
 0x146   : > { %2046 = vmatprep.subr.bf16.mxu0 %v2325_v60  ;;  %v2342_v60 = vld [vmem:[%s3182_s1 + $0x34] ss:$8 sps:$4 sm:$0xff]  }
 0x147   : > { %1265 = vmatpush1.bf16.msra.mxu1 %v2303_v43 }
 0x148   : > { %1266 = vmatprep.subr.bf16.mxu1 %v2310_v46 }
 0x149   : > { %2047 = vmatpush3.bf16.msra.mxu0 %v2326_v61  ;;  %v2340_v61 = vld [vmem:[%s3182_s1 + $0x30] ss:$8 sps:$4 sm:$0xff]  }
 0x14a   : > { %2048 = vmatprep.subr.bf16.mxu0 %v2327_v62  ;;  %v2345_v62 = vld [vmem:[%s3182_s1 + $0x44] ss:$8 sps:$4 sm:$0xff]  }
 0x14b   : > { %1267 = vmatpush1.bf16.msra.mxu1 %v2308_v47 }
 0x14c   : > { %1268 = vmatprep.subr.bf16.mxu1 %v2315_v50 }
 0x14d   : > { %2049 = vmatpush3.bf16.msra.mxu0 %v2328_v63  ;;  %v2343_v63 = vld [vmem:[%s3182_s1 + $0x40] ss:$8 sps:$4 sm:$0xff]  }
 0x14e   : > { %2050 = vmatprep.subr.bf16.mxu0 %v2329_v1  ;;  %v2348_v1 = vld [vmem:[%s3182_s1 + $0x54] ss:$8 sps:$4 sm:$0xff]  }
 0x14f   : > { %1269 = vmatpush1.bf16.msra.mxu1 %v2313_v51 }
 0x150   : > { %1270 = vmatprep.subr.bf16.mxu1 %v2320_v54 }
 0x151   : > { %2051 = vmatpush3.bf16.msra.mxu0 %v2330_v2  ;;  %v2351_v2 = vld [vmem:[%s3182_s1 + $0x64] ss:$8 sps:$4 sm:$0xff]  }
 0x152   : > { %1379 = vmatprep.subr.bf16.mxu0 %v2333_v3  ;;  %v2349_v3 = vld [vmem:[%s3182_s1 + $0x60] ss:$8 sps:$4 sm:$0xff]  }
 0x153   : > { %1271 = vmatpush1.bf16.msra.mxu1 %v2318_v55  ;;  %v2331_v55 = vld [vmem:[%s3182_s1] ss:$8 sps:$4 sm:$0xff]  }
 0x156   : > { %1289 = vmatmul.mubr.bf16.vlgmr.msra.gmra.mrb[4].mxu1 %v3210_v30 }
 0x207   : > { %v795_v4 = vpop.f32.mrb[0].mxu0 }
 0x208   : > { %v931_v5 = vmul.f32 0.044715, %v795_v4  ;;  %v797_v6 = vpop.f32.mrb[1].mxu0  ;;  %v927_v35 = vmul.f32 0.5, %v795_v4 }
 0x209   : > { %v932_v7 = vmul.f32 0.044715, %v797_v6  ;;  %v799_v8 = vpop.f32.mrb[2].mxu0  ;;  %v918_v21 = vpop.f32.mrb[0].mxu1  ;;  %v928_v38 = vmul.f32 0.5, %v797_v6 }
 0x20a   : > { %v935_v9 = vmul.f32 %v931_v5, %v795_v4  ;;  %v933_v10 = vmul.f32 0.044715, %v799_v8  ;;  %v801_v11 = vpop.f32.mrb[3].mxu0  ;;  %v920_v24 = vpop.f32.mrb[1].mxu1  ;;  %v929_v42 = vmul.f32 0.5, %v799_v8 }
 0x20b   : > { %v936_v12 = vmul.f32 %v932_v7, %v797_v6  ;;  %v934_v13 = vmul.f32 0.044715, %v801_v11  ;;  %v922_v27 = vpop.f32.mrb[2].mxu1  ;;  %v930_v45 = vmul.f32 0.5, %v801_v11  ;;  %v2352_v5 = vld [vmem:[%s3182_s1 + $0x70] ss:$8 sps:$4 sm:$0xff]  }
 0x20c   : > { %v939_v14 = vmul.f32 %v935_v9, %v795_v4  ;;  %v937_v15 = vmul.f32 %v933_v10, %v799_v8  ;;  %v924_v31 = vpop.f32.mrb[3].mxu1  ;;  %v2355_v10 = vld [vmem:[%s3189_s8 + $0x40] sm:$0xff]  }
 0x20d   : > { %v940_v16 = vmul.f32 %v936_v12, %v797_v6  ;;  %v938_v17 = vmul.f32 %v934_v13, %v801_v11  ;;  %v2357_v12 = vld [vmem:[%s3189_s8 + $0x48] sm:$0xff]   ;;  %2058 = vmatprep.subr.bf16.mxu1 %v2355_v10 }
 0x20e   : > { %v941_v18 = vmul.f32 %v937_v15, %v799_v8  ;;  %v943_v19 = vadd.f32 %v939_v14, %v795_v4  ;;  %v2354_v4 = vld [vmem:[%s3182_s1 + $0x74] ss:$8 sps:$4 sm:$0xff]   ;;  %v2358_v13 = vld [vmem:[%s3189_s8 + $0x8] sm:$0xff]  }
 0x20f   : > { %v942_v20 = vmul.f32 %v938_v17, %v801_v11  ;;  %v944_v22 = vadd.f32 %v940_v16, %v797_v6  ;;  %v2360_v14 = vld [vmem:[%s3189_s8 + $0x10] sm:$0xff]   ;;  %v2361_v15 = vld [vmem:[%s3189_s8 + $0x58] sm:$0xff]   ;;  %v2363_v17 = vld [vmem:[%s3189_s8 + $0x60] sm:$0xff]  }
 0x210   : > { %v947_v23 = vmul.f32 0.7978846, %v943_v19  ;;  %v945_v25 = vadd.f32 %v941_v18, %v799_v8  ;;  %v2362_v16 = vld [vmem:[%s3189_s8 + $0x18] sm:$0xff]   ;;  %v2364_v18 = vld [vmem:[%s3189_s8 + $0x20] sm:$0xff]   ;;  %v2365_v19 = vld [vmem:[%s3189_s8 + $0x68] sm:$0xff]  }
 0x211   : > { %v948_v26 = vmul.f32 0.7978846, %v944_v22  ;;  %v946_v28 = vadd.f32 %v942_v20, %v801_v11  ;;  %v2356_v11 = vld [vmem:[%s3189_s8] sm:$0xff]   ;;  %v2366_v20 = vld [vmem:[%s3189_s8 + $0x28] sm:$0xff]   ;;  %v2368_v22 = vld [vmem:[%s3189_s8 + $0x30] sm:$0xff]  }
 0x212   : > { %2371 = vtanh.f32 %v947_v23  ;;  %v949_v29 = vmul.f32 0.7978846, %v945_v25  ;;  %2059 = vmatpush3.bf16.msra.mxu1 %v2356_v11  ;;  %v2369_v23 = vld [vmem:[%s3189_s8 + $0x78] sm:$0xff]  }
 0x213   : > { %2373 = vtanh.f32 %v948_v26  ;;  %v950_v32 = vmul.f32 0.7978846, %v946_v28  ;;  %2060 = vmatprep.subr.bf16.mxu1 %v2357_v12 }
 0x214   : > { %2375 = vtanh.f32 %v949_v29 }
 0x215   : > { %2377 = vtanh.f32 %v950_v32 }
 0x216   : > { %2061 = vmatpush3.bf16.msra.mxu1 %v2358_v13 }
 0x21c   : > { %v2372_v33 = vpop.eup %2371 }
 0x21d   : > { %v2374_v34 = vpop.eup %2373  ;;  %v955_v36 = vadd.f32 1.0, %v2372_v33 }
 0x21e   : > { %v2376_v37 = vpop.eup %2375  ;;  %v956_v39 = vadd.f32 1.0, %v2374_v34 }
 0x21f   : > { %v2378_v40 = vpop.eup %2377  ;;  %v959_v41 = vmul.f32 %v955_v36, %v927_v35  ;;  %v957_v43 = vadd.f32 1.0, %v2376_v37 }
 0x220   : > { %v960_v44 = vmul.f32 %v956_v39, %v928_v38  ;;  %v958_v46 = vadd.f32 1.0, %v2378_v40 }
 0x221   : > { %v963_v47 = vmul.f32 %v959_v41, %v918_v21  ;;  %v961_v48 = vmul.f32 %v957_v43, %v929_v42  ;;  %v2367_v21 = vld [vmem:[%s3189_s8 + $0x70] sm:$0xff]  }
 0x222   : > { %v964_v49 = vmul.f32 %v960_v44, %v920_v24  ;;  %v962_v50 = vmul.f32 %v958_v46, %v930_v45  ;;  %v2370_v24 = vld [vmem:[%s3189_s8 + $0x38] sm:$0xff]  }
 0x223   : > { %v965_v51 = vmul.f32 %v961_v48, %v922_v27 }
 0x224   : > { %v966_v52 = vmul.f32 %v962_v50, %v924_v31 }
 0x225   : > { %v967_v53 = vpack.c.bf16 %v965_v51, %v963_v47 }
 0x226   : > { %v968_v54 = vpack.c.bf16 %v966_v52, %v964_v49 }
 0x228   : > { %1097 = vmatprep.mubr.bf16.mxu0 %v968_v54 }
 0x229   : > { %1098 = vmatmul.mubr.bf16.vlgmr.msra.gmra.mrb[4].mxu0 %v967_v53  ;;  %v3250_v6 = vpop.f32.mrb[4].mxu1 }
 0x22a   : > { %1380 = vmatpush1.bf16.msra.mxu0 %v2331_v55  ;;  %1411 = vmatprep.mubr.bf16.mxu0 %v2702_v0  ;;  %v2346_v0 = vld [vmem:[%s3182_s1 + $0x50] ss:$8 sps:$4 sm:$0xff]   ;;  %v3252_v7 = vpop.f32.mrb[5].mxu1  ;;  %v1426_v25 = vmul.f32 0.044715, %v3250_v6 }
 0x22b   : > { %1381 = vmatprep.subr.bf16.mxu0 %v2336_v56  ;;  %v3254_v8 = vpop.f32.mrb[6].mxu1  ;;  %v1427_v26 = vmul.f32 0.044715, %v3252_v7 }
 0x22c   : > { %v3256_v9 = vpop.f32.mrb[7].mxu1  ;;  %v1428_v27 = vmul.f32 0.044715, %v3254_v8  ;;  %v1430_v29 = vmul.f32 %v1426_v25, %v3250_v6 }
 0x22d   : > { %v1429_v28 = vmul.f32 0.044715, %v3256_v9  ;;  %v1431_v31 = vmul.f32 %v1427_v26, %v3252_v7 }
 0x22e   : > { %1382 = vmatpush1.bf16.msra.mxu0 %v2334_v57  ;;  %v1432_v32 = vmul.f32 %v1428_v27, %v3254_v8  ;;  %v1434_v36 = vmul.f32 %v1430_v29, %v3250_v6  ;;  %v1422_v57 = vmul.f32 0.5, %v3250_v6 }
 0x22f   : > { %1383 = vmatprep.subr.bf16.mxu0 %v2339_v58  ;;  %v1433_v34 = vmul.f32 %v1429_v28, %v3256_v9  ;;  %v1435_v39 = vmul.f32 %v1431_v31, %v3252_v7 }
 0x230   : > { %v1436_v41 = vmul.f32 %v1432_v32, %v3254_v8  ;;  %v1438_v45 = vadd.f32 %v1434_v36, %v3250_v6 }
 0x231   : > { %v1437_v43 = vmul.f32 %v1433_v34, %v3256_v9  ;;  %v1439_v46 = vadd.f32 %v1435_v39, %v3252_v7 }
 0x232   : > { %1384 = vmatpush1.bf16.msra.mxu0 %v2337_v59  ;;  %v1440_v47 = vadd.f32 %v1436_v41, %v3254_v8  ;;  %v1442_v49 = vmul.f32 0.7978846, %v1438_v45  ;;  %v1423_v59 = vmul.f32 0.5, %v3252_v7 }
 0x233   : > { %1385 = vmatprep.subr.bf16.mxu0 %v2342_v60  ;;  %v1441_v48 = vadd.f32 %v1437_v43, %v3256_v9  ;;  %v1443_v50 = vmul.f32 0.7978846, %v1439_v46 }
 0x234   : > { %v1444_v51 = vmul.f32 0.7978846, %v1440_v47  ;;  %2379 = vtanh.f32 %v1442_v49 }
 0x235   : > { %v1445_v52 = vmul.f32 0.7978846, %v1441_v48  ;;  %2381 = vtanh.f32 %v1443_v50 }
 0x236   : > { %1386 = vmatpush1.bf16.msra.mxu0 %v2340_v61  ;;  %2383 = vtanh.f32 %v1444_v51  ;;  %v1424_v61 = vmul.f32 0.5, %v3254_v8 }
 0x237   : > { %1387 = vmatprep.subr.bf16.mxu0 %v2345_v62  ;;  %2385 = vtanh.f32 %v1445_v52 }
 0x23a   : > { %1388 = vmatpush1.bf16.msra.mxu0 %v2343_v63  ;;  %v1425_v63 = vmul.f32 0.5, %v3256_v9 }
 0x23b   : > { %1389 = vmatprep.subr.bf16.mxu0 %v2348_v1 }
 0x23e   : > { %1390 = vmatpush1.bf16.msra.mxu0 %v2346_v0  ;;  %v2380_v53 = vpop.eup %2379 }
 0x23f   : > { %1391 = vmatprep.subr.bf16.mxu0 %v2351_v2  ;;  %v2382_v54 = vpop.eup %2381  ;;  %v1450_v58 = vadd.f32 1.0, %v2380_v53 }
 0x240   : > { %v2384_v55 = vpop.eup %2383  ;;  %v1451_v60 = vadd.f32 1.0, %v2382_v54 }
 0x241   : > { %v2386_v56 = vpop.eup %2385  ;;  %v1452_v62 = vadd.f32 1.0, %v2384_v55  ;;  %v1454_v0 = vmul.f32 %v1450_v58, %v1422_v57 }
 0x242   : > { %1392 = vmatpush1.bf16.msra.mxu0 %v2349_v3  ;;  %v1453_v1 = vadd.f32 1.0, %v2386_v56  ;;  %v1455_v3 = vmul.f32 %v1451_v60, %v1423_v59 }
 0x243   : > { %1393 = vmatprep.subr.bf16.mxu0 %v2354_v4  ;;  %v1456_v10 = vmul.f32 %v1452_v62, %v1424_v61 }
 0x244   : > { %v1457_v6 = vmul.f32 %v1453_v1, %v1425_v63 }
 0x246   : > { %1394 = vmatpush1.bf16.msra.mxu0 %v2352_v5 }
 0x249   : > { %1412 = vmatmul.mubr.bf16.vlgmr.msra.gmra.mrb[8].mxu0 %v3210_v30  ;;  %v2359_v30 = vld [vmem:[%s3189_s8 + $0x50] sm:$0xff]  }
 0x24a   : > { %2062 = vmatprep.subr.bf16.mxu1 %v2359_v30 }
 0x24b   : > { %2063 = vmatpush3.bf16.msra.mxu1 %v2360_v14 }
 0x24c   : > { %2064 = vmatprep.subr.bf16.mxu1 %v2361_v15 }
 0x24f   : > { %2065 = vmatpush3.bf16.msra.mxu1 %v2362_v16 }
 0x250   : > { %2066 = vmatprep.subr.bf16.mxu1 %v2363_v17 }
 0x253   : > { %2067 = vmatpush3.bf16.msra.mxu1 %v2364_v18 }
 0x254   : > { %2068 = vmatprep.subr.bf16.mxu1 %v2365_v19 }
 0x257   : > { %2069 = vmatpush3.bf16.msra.mxu1 %v2366_v20 }
 0x258   : > { %2070 = vmatprep.subr.bf16.mxu1 %v2367_v21 }
 0x25b   : > { %2071 = vmatpush3.bf16.msra.mxu1 %v2368_v22 }
 0x25c   : > { %2072 = vmatprep.subr.bf16.mxu1 %v2369_v23 }
 0x25f   : > { %2073 = vmatpush3.bf16.msra.mxu1 %v2370_v24 }
 0x2fc   : > { %v2052_v33 = vpop.f32.mrb[4].mxu0 }
 0x2fd   : > { %v2053_v35 = vpop.f32.mrb[5].mxu0 }
 0x2fe   : > { %v2054_v37 = vadd.f32 %v2053_v35, %v2052_v33  ;;  %v2055_v38 = vpop.f32.mrb[6].mxu0 }
 0x2ff   : > { %v2056_v40 = vpop.f32.mrb[7].mxu0 }
 0x300   : > { %v2057_v42 = vadd.f32 %v2056_v40, %v2055_v38 }
 0x302   : > { %v2029_v44 = vpack.c.bf16 %v2057_v42, %v2054_v37 }
 0x304   : > { %2030 = vst [vmem:[%s586_s26] sm:$0xff] %v2029_v44  }
 0x31c   : > { %v1413_v2 = vpop.f32.mrb[8].mxu0 }
 0x31d   : > { %v1458_v4 = vmul.f32 %v1454_v0, %v1413_v2  ;;  %v1415_v5 = vpop.f32.mrb[9].mxu0 }
 0x31e   : > { %v1459_v11 = vmul.f32 %v1455_v3, %v1415_v5  ;;  %v1417_v12 = vpop.f32.mrb[10].mxu0 }
 0x31f   : > { %v1460_v13 = vmul.f32 %v1456_v10, %v1417_v12  ;;  %v1419_v30 = vpop.f32.mrb[11].mxu0 }
 0x320   : > { %v1461_v7 = vmul.f32 %v1457_v6, %v1419_v30 }
 0x321   : > { %v1462_v14 = vpack.c.bf16 %v1460_v13, %v1458_v4 }
 0x322   : > { %v1463_v15 = vpack.c.bf16 %v1461_v7, %v1459_v11 }
 0x324   : > { %1592 = vmatprep.mubr.bf16.mxu1 %v1463_v15 }
 0x325   : > { %1593 = vmatmul.mubr.bf16.vlgmr.msra.gmra.mrb[8].mxu1 %v1462_v14 }
 0x3f8   : > { %v2074_v8 = vpop.f32.mrb[8].mxu1 }
 0x3f9   : > { %v2075_v9 = vpop.f32.mrb[9].mxu1 }
 0x3fa   : > { %v2076_v16 = vadd.f32 %v2075_v9, %v2074_v8  ;;  %v2077_v17 = vpop.f32.mrb[10].mxu1 }
 0x3fb   : > { %v2078_v18 = vpop.f32.mrb[11].mxu1 }
 0x3fc   : > { %v2079_v19 = vadd.f32 %v2078_v18, %v2077_v17 }
 0x3fe   : > { %v2034_v20 = vpack.c.bf16 %v2079_v19, %v2076_v16 }
 0x400   : > { %2035 = vst [vmem:[%s596_s7] sm:$0xff] %v2034_v20  }
 0x401 PF: > { %s34_s24 = sadd.s32 1, %s2689_s24   ;;  %s3439_s19 = sld [smem:[#allocation29_spill]] }
 0x402   : > { %p31_p4 = scmp.ge.s32.totalorder %s34_s24, 4   ;;  %s3440_s20 = sld [smem:[#allocation30_spill]] }
 0x403   : > { %s3441_s21 = sld [smem:[#allocation34_spill]]  ;;  %s3442_s0 = smov %s2649_s14 }
 0x404   : > { %s3443_s14 = smov %s2653_s15  ;;  %s3444_s15 = smov %s3105_s3 }
 0x405   : > { %s3445_s16 = smov %s2661_s17  ;;  %s3446_s17 = smov %s2665_s18 }
 0x406   : > { %s3447_s18 = smov %s3021_s13  ;;  %s3448_s22 = smov %s2685_s23 }
 0x407   : > { %s3449_s23 = smov %s3451_s12  ;;  %33 = sbr.rel (!%p31_p4) target bundleno = 28 (0x1c), region = 151 }
 0x40e   :  { %1687 = vsyncpa [#allocation7], 1 }
 0x40f   :  { %1689 = vsyncpa [#allocation7 + $0x1], 1 }
 0x410   :  { %1690 = vsyncpa [#allocation9], 1 }
 0x411   :  { %1691 = vsyncpa [#allocation12], 1 }
 0x412   :  { %1693 = vsyncpa [#allocation12 + $0x1], 1 }
 0x413   :  { %1694 = vsyncpa [#allocation15], 1 }
 0x414   :  { %1696 = vsyncpa [#allocation15 + $0x1], 1 }

</bundles_post_ra>
